<compile_context>
chip_gen: v7x
topology: tpu7x:2x2x1
jax: 0.10.0
libtpu: 0.0.40
codegen_flags: <defaults>
</compile_context>

<pallas_src>
import functools

import jax
import jax.numpy as jnp
from jax import lax
from jax.experimental import pallas as pl
from jax.experimental.pallas import tpu as pltpu


def _round_up(x, m):
    return (x + m - 1) // m * m


def _gram_kernel(x1_ref, x2_ref, g1_ref, g2_ref, *,
                 kh, d1p, d2p, tk1, tk2, kt1, kt2):
    """Accumulate this K-split's partial centered Grams of both inputs."""
    c = pl.program_id(0)           # K-range split (parallel, one per TC)
    k = pl.program_id(1)           # K tile within the split (reduction)
    k_glob = c * kh + k            # global K tile index

    @pl.when(k == 0)
    def _init():
        g1_ref[...] = jnp.zeros_like(g1_ref)
        g2_ref[...] = jnp.zeros_like(g2_ref)

    dn = (((1,), (1,)), ((), ()))  # X @ X^T: contract the lane (feature) dim

    def accumulate(x_ref, g_ref, dpad, tk, kt):
        def add(valid_lanes):
            x = x_ref[...].astype(jnp.float32)
            if valid_lanes is not None:
                # Ragged last tile: lanes >= valid_lanes are out-of-bounds
                # garbage from the boundary block -> zero them.
                lane = lax.broadcasted_iota(jnp.int32, x.shape, 1)
                x = jnp.where(lane < valid_lanes, x, 0.0)
            # Column-center over the batch.  Every feature column lives
            # entirely inside one tile, so this equals the global mean over
            # dim 0 of the original input (zero/pad columns stay zero).
            x = x - jnp.mean(x, axis=0, keepdims=True)
            # A @ A^T on the MXU with f32 accumulation.
            # TODO(synk): if pl.lower_as_mlir ever shows Mosaic inserting an
            # XLU transpose of the wide (B, tk) operand here, switch to
            # pl.dot(x, x, trans_b=True); at current tile sizes it hides
            # under the DMA anyway.
            g_ref[...] += lax.dot_general(x, x, dn,
                                          preferred_element_type=jnp.float32)

        rem = dpad % tk            # static: valid lanes in the last K tile
        if rem == 0:               # tiles divide the (128-aligned) width
            @pl.when(k_glob < kt)
            def _():
                add(None)
        else:                      # mask only the single ragged last tile
            @pl.when(k_glob < kt - 1)
            def _():
                add(None)

            @pl.when(k_glob == kt - 1)
            def _():
                add(rem)

    accumulate(x1_ref, g1_ref, d1p, tk1, kt1)
    accumulate(x2_ref, g2_ref, d2p, tk2, kt2)


def diff_loss(input1, input2, *, lane_tile=16384, num_core_splits=2):
    """input1: (B, D1), input2: (B, D2) -> scalar float32 DiffLoss.

    B is assumed modest (kept resident as the sublane dim of every tile and as
    B x B accumulators); D1/D2 may be large and are each streamed exactly once.
    lane_tile: ~8192 (v5e), 16384 (v6e), 32768 (v7x) reach the HBM roofline.
    num_core_splits: 2 lets both v7x TensorCores stream; harmless elsewhere.
    """
    b, d1 = input1.shape
    b2, d2 = input2.shape
    assert b == b2, "batch dimensions must match"

    tk_cap = max(128, (lane_tile // 128) * 128)

    def prep(x, d):
        # Only align the feature dim to 128 lanes (zero columns are inert for
        # means / norms / Grams); never pad up to the other input or to the
        # full lane tile.
        dpad = _round_up(d, 128)
        if dpad != d:
            x = jnp.pad(x, ((0, 0), (0, dpad - d)))
        tk = dpad if dpad <= tk_cap else tk_cap
        return x, dpad, tk, pl.cdiv(dpad, tk)

    x1, d1p, tk1, kt1 = prep(input1, d1)
    x2, d2p, tk2, kt2 = prep(input2, d2)

    kt = max(kt1, kt2)
    nc = max(1, min(num_core_splits, kt))   # number of K-range splits
    kh = pl.cdiv(kt, nc)                    # K tiles per split

    kernel = functools.partial(_gram_kernel, kh=kh, d1p=d1p, d2p=d2p,
                               tk1=tk1, tk2=tk2, kt1=kt1, kt2=kt2)

    g1_parts, g2_parts = pl.pallas_call(
        kernel,
        out_shape=(jax.ShapeDtypeStruct((nc, b, b), jnp.float32),
                   jax.ShapeDtypeStruct((nc, b, b), jnp.float32)),
        grid_spec=pltpu.PrefetchScalarGridSpec(
            num_scalar_prefetch=0,
            grid=(nc, kh),
            in_specs=[
                # Clamp each input's tile index to its own extent: once an
                # input is exhausted the block index repeats, so Pallas does
                # not issue a new DMA while the other input keeps streaming.
                pl.BlockSpec((b, tk1),
                             lambda c, k: (0, jnp.minimum(c * kh + k, kt1 - 1))),
                pl.BlockSpec((b, tk2),
                             lambda c, k: (0, jnp.minimum(c * kh + k, kt2 - 1))),
            ],
            out_specs=[
                # One partial (B, B) Gram per K-split, resident across the
                # reduction axis (same block index for every k).
                pl.BlockSpec((None, b, b), lambda c, k: (c, 0, 0)),
                pl.BlockSpec((None, b, b), lambda c, k: (c, 0, 0)),
            ],
        ),
        compiler_params=pltpu.CompilerParams(
            # Leading split axis may shard across TensorCores (v7x megacore);
            # the K axis is a reduction and must stay "arbitrary".
            dimension_semantics=("parallel", "arbitrary"),
        ),
    )(x1, x2)

    # Tiny epilogue on B x B arrays: combine per-split partials, normalize by
    # the centered row norms (= sqrt(diag(Gram))), and reduce.
    g1 = jnp.sum(g1_parts, axis=0)
    g2 = jnp.sum(g2_parts, axis=0)

    def normalize(g):
        n = jnp.sqrt(jnp.maximum(jnp.diagonal(g), 0.0))
        inv = 1.0 / (n + 1e-6)               # matches torch: x / (norm + 1e-6)
        return g * inv[:, None] * inv[None, :]

    # TODO(synk): forward-only; wrap in jax.custom_vjp to reproduce PyTorch's
    # .detach()-on-the-norms backward semantics if gradients are needed.
    return jnp.sum(normalize(g1) * normalize(g2)) * (1.0 / (d1 * d2))


def _diff_loss_ref(input1, input2):
    """Pure-JAX reference with the original (direct) formulation."""
    x1 = input1.astype(jnp.float32)
    x2 = input2.astype(jnp.float32)
    x1 = x1 - jnp.mean(x1, axis=0, keepdims=True)
    x2 = x2 - jnp.mean(x2, axis=0, keepdims=True)
    x1 = x1 / (jnp.linalg.norm(x1, axis=1, keepdims=True) + 1e-6)
    x2 = x2 / (jnp.linalg.norm(x2, axis=1, keepdims=True) + 1e-6)
    return jnp.mean((x1.T @ x2) ** 2)


if __name__ == "__main__":
    key = jax.random.PRNGKey(0)
    k1, k2, k3, k4, k5, k6 = jax.random.split(key, 6)

    # Case A: single tile per input, unaligned feature dims (48 / 32 are only
    # padded to 128 lanes), single K-split.
    a1 = jax.random.normal(k1, (8, 48), dtype=jnp.float32)
    a2 = jax.random.normal(k2, (8, 32), dtype=jnp.float32)
    loss_a = diff_loss(a1, a2)
    jax.block_until_ready(loss_a)
    ref_a = _diff_loss_ref(a1, a2)
    assert jnp.allclose(loss_a, ref_a, rtol=1e-4, atol=1e-6), (loss_a, ref_a)

    # Case B: unequal per-input K extents (kt1=3, kt2=2), ragged last tile of
    # input1 masked in-kernel, 2-way core split with clamped index maps.
    # (lane_tile kept small only to exercise the tiling paths at small shapes.)
    b1 = jax.random.normal(k3, (8, 1000), dtype=jnp.float32)
    b2 = jax.random.normal(k4, (8, 700), dtype=jnp.float32)
    loss_b = diff_loss(b1, b2, lane_tile=384)
    jax.block_until_ready(loss_b)
    ref_b = _diff_loss_ref(b1, b2)
    assert jnp.allclose(loss_b, ref_b, rtol=1e-4, atol=1e-6), (loss_b, ref_b)

    # Case C: aligned dims, exactly divisible tiles (no masking), different
    # K extents (kt1=5, kt2=3) across the 2-way split.
    c1 = jax.random.normal(k5, (8, 640), dtype=jnp.float32)
    c2 = jax.random.normal(k6, (8, 384), dtype=jnp.float32)
    loss_c = diff_loss(c1, c2, lane_tile=128)
    jax.block_until_ready(loss_c)
    ref_c = _diff_loss_ref(c1, c2)
    assert jnp.allclose(loss_c, ref_c, rtol=1e-4, atol=1e-6), (loss_c, ref_c)

    print("KERNEL_OK")
</pallas_src>

<mosaic_0001>
module attributes {stable_mosaic.version = 11 : i64} {
  func.func @_gram_kernel(%arg0: i32, %arg1: i32, %arg2: memref<8x128xf32, #tpu.memory_space<vmem>>, %arg3: memref<8x128xf32, #tpu.memory_space<vmem>>, %arg4: memref<1x8x8xf32, #tpu.memory_space<vmem>>, %arg5: memref<1x8x8xf32, #tpu.memory_space<vmem>>) attributes {dimension_semantics = [#tpu.dimension_semantics<parallel>, #tpu.dimension_semantics<arbitrary>], iteration_bounds = array<i64: 1, 1>, scalar_prefetch = 0 : i64, scratch_operands = 0 : i64, tpu.core_type = #tpu.core_type<tc>, window_params = [{transform_indices = @transform_0, window_bounds = array<i64: 8, 128>}, {transform_indices = @transform_1, window_bounds = array<i64: 8, 128>}, {transform_indices = @transform_2, window_bounds = array<i64: 1, 8, 8>}, {transform_indices = @transform_3, window_bounds = array<i64: 1, 8, 8>}]} {
    %c1_i32 = arith.constant 1 : i32
    %0 = arith.muli %arg0, %c1_i32 : i32
    %1 = arith.addi %0, %arg1 : i32
    %c0_i32 = arith.constant 0 : i32
    %2 = arith.cmpi eq, %arg1, %c0_i32 : i32
    %3 = arith.extui %2 : i1 to i32
    %c0_i32_0 = arith.constant 0 : i32
    %4 = arith.cmpi ne, %3, %c0_i32_0 : i32
    scf.if %4 {
      %cst = arith.constant 0.000000e+00 : f32
      %11 = vector.broadcast %cst : f32 to vector<8x8xf32>
      %c0 = arith.constant 0 : index
      %c0_5 = arith.constant 0 : index
      %c0_6 = arith.constant 0 : index
      %12 = vector.load %arg4[%c0, %c0_5, %c0_6] : memref<1x8x8xf32, #tpu.memory_space<vmem>>, vector<1x8x8xf32>
      %13 = vector.shape_cast %12 : vector<1x8x8xf32> to vector<8x8xf32>
      %14 = vector.shape_cast %11 : vector<8x8xf32> to vector<1x8x8xf32>
      tpu.vector_store %arg4[%c0, %c0_5, %c0_6], %14 {strides = array<i32>} : memref<1x8x8xf32, #tpu.memory_space<vmem>>, vector<1x8x8xf32>,
      %cst_7 = arith.constant 0.000000e+00 : f32
      %15 = vector.broadcast %cst_7 : f32 to vector<8x8xf32>
      %c0_8 = arith.constant 0 : index
      %c0_9 = arith.constant 0 : index
      %c0_10 = arith.constant 0 : index
      %16 = vector.load %arg5[%c0_8, %c0_9, %c0_10] : memref<1x8x8xf32, #tpu.memory_space<vmem>>, vector<1x8x8xf32>
      %17 = vector.shape_cast %16 : vector<1x8x8xf32> to vector<8x8xf32>
      %18 = vector.shape_cast %15 : vector<8x8xf32> to vector<1x8x8xf32>
      tpu.vector_store %arg5[%c0_8, %c0_9, %c0_10], %18 {strides = array<i32>} : memref<1x8x8xf32, #tpu.memory_space<vmem>>, vector<1x8x8xf32>,
    } else {
    }
    %c1_i32_1 = arith.constant 1 : i32
    %5 = arith.cmpi slt, %1, %c1_i32_1 : i32
    %6 = arith.extui %5 : i1 to i32
    %c0_i32_2 = arith.constant 0 : i32
    %7 = arith.cmpi ne, %6, %c0_i32_2 : i32
    scf.if %7 {
      %c0 = arith.constant 0 : index
      %c0_5 = arith.constant 0 : index
      %11 = vector.load %arg2[%c0, %c0_5] : memref<8x128xf32, #tpu.memory_space<vmem>>, vector<8x128xf32>
      %cst = arith.constant dense<0.000000e+00> : vector<128xf32>
      %12 = vector.multi_reduction <add>, %11, %cst [0] : vector<8x128xf32> to vector<128xf32>
      %13 = vector.shape_cast %12 : vector<128xf32> to vector<1x128xf32>
      %cst_6 = arith.constant 8.000000e+00 : f32
      %14 = vector.broadcast %cst_6 : f32 to vector<1x128xf32>
      %15 = arith.divf %13, %14 : vector<1x128xf32>
      %16 = vector.broadcast %15 : vector<1x128xf32> to vector<8x128xf32>
      %17 = arith.subf %11, %16 : vector<8x128xf32>
      %c0_7 = arith.constant 0 : index
      %c0_8 = arith.constant 0 : index
      %c0_9 = arith.constant 0 : index
      %18 = vector.load %arg4[%c0_7, %c0_8, %c0_9] : memref<1x8x8xf32, #tpu.memory_space<vmem>>, vector<1x8x8xf32>
      %19 = vector.shape_cast %18 : vector<1x8x8xf32> to vector<8x8xf32>
      %cst_10 = arith.constant dense<0.000000e+00> : vector<8x8xf32>
      %20 = tpu.matmul %17, %17, %cst_10 {dimension_numbers = #tpu.dot_dimension_numbers<[1], [1], [0], [0], [0, 0, 1, 0], [], []>} : vector<8x128xf32>, vector<8x128xf32>, vector<8x8xf32> -> vector<8x8xf32>
      %21 = arith.addf %19, %20 : vector<8x8xf32>
      %c0_11 = arith.constant 0 : index
      %c0_12 = arith.constant 0 : index
      %c0_13 = arith.constant 0 : index
      %22 = vector.load %arg4[%c0_11, %c0_12, %c0_13] : memref<1x8x8xf32, #tpu.memory_space<vmem>>, vector<1x8x8xf32>
      %23 = vector.shape_cast %22 : vector<1x8x8xf32> to vector<8x8xf32>
      %24 = vector.shape_cast %21 : vector<8x8xf32> to vector<1x8x8xf32>
      tpu.vector_store %arg4[%c0_11, %c0_12, %c0_13], %24 {strides = array<i32>} : memref<1x8x8xf32, #tpu.memory_space<vmem>>, vector<1x8x8xf32>,
    } else {
    }
    %c1_i32_3 = arith.constant 1 : i32
    %8 = arith.cmpi slt, %1, %c1_i32_3 : i32
    %9 = arith.extui %8 : i1 to i32
    %c0_i32_4 = arith.constant 0 : i32
    %10 = arith.cmpi ne, %9, %c0_i32_4 : i32
    scf.if %10 {
      %c0 = arith.constant 0 : index
      %c0_5 = arith.constant 0 : index
      %11 = vector.load %arg3[%c0, %c0_5] : memref<8x128xf32, #tpu.memory_space<vmem>>, vector<8x128xf32>
      %cst = arith.constant dense<0.000000e+00> : vector<128xf32>
      %12 = vector.multi_reduction <add>, %11, %cst [0] : vector<8x128xf32> to vector<128xf32>
      %13 = vector.shape_cast %12 : vector<128xf32> to vector<1x128xf32>
      %cst_6 = arith.constant 8.000000e+00 : f32
      %14 = vector.broadcast %cst_6 : f32 to vector<1x128xf32>
      %15 = arith.divf %13, %14 : vector<1x128xf32>
      %16 = vector.broadcast %15 : vector<1x128xf32> to vector<8x128xf32>
      %17 = arith.subf %11, %16 : vector<8x128xf32>
      %c0_7 = arith.constant 0 : index
      %c0_8 = arith.constant 0 : index
      %c0_9 = arith.constant 0 : index
      %18 = vector.load %arg5[%c0_7, %c0_8, %c0_9] : memref<1x8x8xf32, #tpu.memory_space<vmem>>, vector<1x8x8xf32>
      %19 = vector.shape_cast %18 : vector<1x8x8xf32> to vector<8x8xf32>
      %cst_10 = arith.constant dense<0.000000e+00> : vector<8x8xf32>
      %20 = tpu.matmul %17, %17, %cst_10 {dimension_numbers = #tpu.dot_dimension_numbers<[1], [1], [0], [0], [0, 0, 1, 0], [], []>} : vector<8x128xf32>, vector<8x128xf32>, vector<8x8xf32> -> vector<8x8xf32>
      %21 = arith.addf %19, %20 : vector<8x8xf32>
      %c0_11 = arith.constant 0 : index
      %c0_12 = arith.constant 0 : index
      %c0_13 = arith.constant 0 : index
      %22 = vector.load %arg5[%c0_11, %c0_12, %c0_13] : memref<1x8x8xf32, #tpu.memory_space<vmem>>, vector<1x8x8xf32>
      %23 = vector.shape_cast %22 : vector<1x8x8xf32> to vector<8x8xf32>
      %24 = vector.shape_cast %21 : vector<8x8xf32> to vector<1x8x8xf32>
      tpu.vector_store %arg5[%c0_11, %c0_12, %c0_13], %24 {strides = array<i32>} : memref<1x8x8xf32, #tpu.memory_space<vmem>>, vector<1x8x8xf32>,
    } else {
    }
    return
  }
  func.func @transform_0(%arg0: i32, %arg1: i32) -> (i32, i32) {
    %c1_i32 = arith.constant 1 : i32
    %0 = arith.muli %arg0, %c1_i32 : i32
    %1 = arith.addi %0, %arg1 : i32
    %c0_i32 = arith.constant 0 : i32
    %2 = arith.minsi %1, %c0_i32 : i32
    %c0_i32_0 = arith.constant 0 : i32
    %c0_i32_1 = arith.constant 0 : i32
    return %c0_i32_0, %2 : i32, i32
  }
  func.func @transform_1(%arg0: i32, %arg1: i32) -> (i32, i32) {
    %c1_i32 = arith.constant 1 : i32
    %0 = arith.muli %arg0, %c1_i32 : i32
    %1 = arith.addi %0, %arg1 : i32
    %c0_i32 = arith.constant 0 : i32
    %2 = arith.minsi %1, %c0_i32 : i32
    %c0_i32_0 = arith.constant 0 : i32
    %c0_i32_1 = arith.constant 0 : i32
    return %c0_i32_0, %2 : i32, i32
  }
  func.func @transform_2(%arg0: i32, %arg1: i32) -> (i32, i32, i32) {
    %c0_i32 = arith.constant 0 : i32
    %c0_i32_0 = arith.constant 0 : i32
    %c0_i32_1 = arith.constant 0 : i32
    return %arg0, %c0_i32, %c0_i32_0 : i32, i32, i32
  }
  func.func @transform_3(%arg0: i32, %arg1: i32) -> (i32, i32, i32) {
    %c0_i32 = arith.constant 0 : i32
    %c0_i32_0 = arith.constant 0 : i32
    %c0_i32_1 = arith.constant 0 : i32
    return %arg0, %c0_i32, %c0_i32_0 : i32, i32, i32
  }
}

</mosaic_0001>

<bundles_post_ra>
// kernel: tpu_custom_call.1
= control target key start
LH: loop header
LB: loop body
LE: loop exit
PB: predicated region body
PF: predicated region fallthrough
CT: control target
= control target key end

     0   :  { %9 = vsyncpa [#allocation3], 0  ;;  %s461_s0 = inlined_call_operand.hbm [shape: f32[8,128], index: 0, kind: input, shape index: {}]   ;;  %s462_s1 = inlined_call_operand.hbm [shape: f32[8,128], index: 1, kind: input, shape index: {}]   ;;  %s463_s2 = inlined_call_operand.hbm [shape: f32[1,8,8], index: 2, kind: output, shape index: {0}]   ;;  %s464_s3 = inlined_call_operand.hbm [shape: f32[1,8,8], index: 3, kind: output, shape index: {1}]  }
   0x1   :  { %10 = vsyncpa [#allocation6], 0 }
   0x2   :  { %11 = vsyncpa [#allocation4], 0 }
   0x3   :  { %12 = vsyncpa [#allocation9], 0  ;;  %s383_s12 = smov [#allocation2]   ;;  %s384_s14 = smov [#allocation5]  }
   0x4   :  { %s24_s13 = sshll.u32 %s383_s12, 4  ;;  %s39_s15 = sshll.u32 %s384_s14, 4  ;;  %s25_s13 = int_to_ptr.vmem [resolvable:$true] %s24_s13  ;;  %s40_s15 = int_to_ptr.vmem [resolvable:$true] %s39_s15 }
   0x5   :  { %s287_s18 = scalar_lea.hbm %s461_s0, 128 }
   0x6   :  { %p288_p0 = scmp.ne.s32.totalorder %s461_s0, %s287_s18  ;;  %p291_p1 = scmp.lt.u32.totalorder %s287_s18, %s461_s0 }
   0x8   :  { %p293_p2 = pnand %p291_p1, %p288_p0 }
   0xa   :  { %296 = shalt.err (!%p293_p2)
}
   0xb   :  { %s297_s23 = scalar_lea.vmem %s25_s13, 128  ;;  %p302_p4 = scmp.lt.s32.totalorder %s25_s13, %s25_s13 }
   0xc   :  { %p298_p3 = scmp.ne.s32.totalorder %s25_s13, %s297_s23  ;;  %p303_p5 = scmp.lt.s32.totalorder %s297_s23, %s297_s23 }
   0xe   :  { %p304_p6 = por %p303_p5, %p302_p4 }
  0x10   :  { %p305_p7 = pnand %p304_p6, %p298_p3 }
  0x12   :  { %308 = shalt.err (!%p305_p7)
}
  0x13   :  { %27 = dma.hbm_to_vmem [thread:$0]  %s461_s0, 128, %s25_s13, [#allocation3]  }
  0x14   :  { %s309_s28 = scalar_lea.hbm %s462_s1, 128 }
  0x15   :  { %p310_p8 = scmp.ne.s32.totalorder %s462_s1, %s309_s28  ;;  %p313_p9 = scmp.lt.u32.totalorder %s309_s28, %s462_s1 }
  0x17   :  { %p315_p10 = pnand %p313_p9, %p310_p8 }
  0x19   :  { %318 = shalt.err (!%p315_p10)
}
  0x1a   :  { %s319_s6 = scalar_lea.vmem %s40_s15, 128  ;;  %p324_p12 = scmp.lt.s32.totalorder %s40_s15, %s40_s15 }
  0x1b   :  { %p320_p11 = scmp.ne.s32.totalorder %s40_s15, %s319_s6  ;;  %p325_p13 = scmp.lt.s32.totalorder %s319_s6, %s319_s6 }
  0x1d   :  { %p326_p0 = por %p325_p13, %p324_p12 }
  0x1f   :  { %p327_p1 = pnand %p326_p0, %p320_p11 }
  0x21   :  { %330 = shalt.err (!%p327_p1)
}
  0x22   :  { %42 = dma.hbm_to_vmem [thread:$0]  %s462_s1, 128, %s40_s15, [#allocation6]  }
  0x23   :  { %375 = dma.done.wait [#allocation3], 128  }
  0x24   :  { %376 = vsyncadd [#allocation3], 4294967168 }
  0x25   :  { %377 = dma.done.wait [#allocation6], 128  }
  0x26   :  { %378 = vsyncadd [#allocation6], 4294967168  ;;  %vm60_vm0 = vcmask 64512   ;;  %v385_v0 = vmov 0.0   ;;  %vm386_vm1 = vmmov 0   ;;  %v67_v1 = vld [vmem:[#allocation2] sm:$0xff] }
  0x27   :  { %61 = vst.msk [vmem:[#allocation7] sm:$0xff] %vm60_vm0, %v385_v0  ;;  %62 = vst.msk [vmem:[#allocation8] sm:$0xff] %vm60_vm0, %v385_v0  ;;  %271 = vmatprep.subr.mxu0 %v385_v0  ;;  %276 = vmatprep.subr.mxu1 %v385_v0  ;;  %v151_v2 = vld [vmem:[#allocation5] sm:$0xff]  ;;  %v68_v3 = vrot.slane %v67_v1, 4  ;;  %s387_s1 = smov [#allocation7]   ;;  %s388_s9 = smov [#allocation8]  }
  0x28   :  { %273 = vmatprep.mubr.msk.f32.mxu0 %vm386_vm1, %v385_v0  ;;  %278 = vmatprep.mubr.msk.f32.mxu1 %vm386_vm1, %v385_v0  ;;  %v152_v4 = vrot.slane %v151_v2, 4  ;;  %s239_s8 = sshll.u32 %s387_s1, 4  ;;  %s249_s10 = sshll.u32 %s388_s9, 4  ;;  %s240_s8 = int_to_ptr.vmem [resolvable:$true] %s239_s8  ;;  %s250_s10 = int_to_ptr.vmem [resolvable:$true] %s249_s10 }
  0x29   :  { %v69_v5 = vadd.f32 %v68_v3, %v67_v1  ;;  %s331_s11 = scalar_lea.vmem %s240_s8, 128  ;;  %p336_p3 = scmp.lt.s32.totalorder %s240_s8, %s240_s8 }
  0x2a   :  { %v153_v6 = vadd.f32 %v152_v4, %v151_v2  ;;  %p332_p2 = scmp.ne.s32.totalorder %s240_s8, %s331_s11  ;;  %p337_p4 = scmp.lt.s32.totalorder %s331_s11, %s331_s11 }
  0x2b   :  { %v70_v7 = vrot.slane %v69_v5, 2 }
  0x2c   :  { %v154_v8 = vrot.slane %v153_v6, 2  ;;  %p338_p5 = por %p337_p4, %p336_p3 }
  0x2d   :  { %v71_v9 = vadd.f32 %v70_v7, %v69_v5 }
  0x2e   :  { %v155_v10 = vadd.f32 %v154_v8, %v153_v6  ;;  %v77_v19 = vld [vmem:[#allocation7] sm:$0xff]  ;;  %v160_v20 = vld [vmem:[#allocation8] sm:$0xff]  ;;  %p339_p6 = pnand %p338_p5, %p332_p2 }
  0x2f   :  { %v72_v11 = vrot.slane %v71_v9, 1 }
  0x30   :  { %v156_v12 = vrot.slane %v155_v10, 1 }
  0x31   :  { %v73_v13 = vadd.f32 %v72_v11, %v71_v9 }
  0x32   :  { %v157_v14 = vadd.f32 %v156_v12, %v155_v10 }
  0x33   :  { %v75_v15 = vmul.f32 0.125, %v73_v13 }
  0x34   :  { %v158_v16 = vmul.f32 0.125, %v157_v14 }
  0x35   :  { %v76_v17 = vsub.f32 %v67_v1, %v75_v15 }
  0x36   :  { %v159_v18 = vsub.f32 %v151_v2, %v158_v16 }
  0x37   :  { %272 = vmatpush3.xpose.msra.mxu0 %v76_v17 }
  0x38   :  { %277 = vmatpush3.xpose.msra.mxu1 %v159_v18 }
  0x3a   :  { %274 = vmatmul.mubr.f32.vlgmr.msra.gmra.mrb[0].mxu0 %v76_v17 }
  0x3b   :  { %279 = vmatmul.mubr.f32.vlgmr.msra.gmra.mrb[0].mxu1 %v159_v18 }
 0x10d   :  { %v144_v21 = vpop.f32.mrb[0].mxu0 }
 0x10e   :  { %v227_v22 = vpop.f32.mrb[0].mxu1  ;;  %v148_v23 = vadd.f32 %v144_v21, %v77_v19  ;;  %v275_v25 = vpop.f32.mrb[1].mxu0 }
 0x10f   :  { %v231_v24 = vadd.f32 %v227_v22, %v160_v20  ;;  %v280_v26 = vpop.f32.mrb[1].mxu1 }
 0x110   :  { %150 = vst.msk [vmem:[#allocation7] sm:$0xff] %vm60_vm0, %v148_v23 }
 0x111   :  { %232 = vst.msk [vmem:[#allocation8] sm:$0xff] %vm60_vm0, %v231_v24 }
 0x112   :  { %342 = shalt.err (!%p339_p6)
}
 0x113   :  { %s343_s14 = scalar_lea.hbm %s463_s2, 128 }
 0x114   :  { %p344_p7 = scmp.ne.s32.totalorder %s463_s2, %s343_s14  ;;  %p347_p8 = scmp.lt.u32.totalorder %s343_s14, %s463_s2 }
 0x116   :  { %p349_p9 = pnand %p347_p8, %p344_p7 }
 0x118   :  { %352 = shalt.err (!%p349_p9)
}
 0x119   :  { %242 = dma.vmem_to_hbm [thread:$0]  %s240_s8, 128, %s463_s2, [#allocation4]  }
 0x11a   :  { %s353_s21 = scalar_lea.vmem %s250_s10, 128  ;;  %p358_p11 = scmp.lt.s32.totalorder %s250_s10, %s250_s10 }
 0x11b   :  { %p354_p10 = scmp.ne.s32.totalorder %s250_s10, %s353_s21  ;;  %p359_p12 = scmp.lt.s32.totalorder %s353_s21, %s353_s21 }
 0x11d   :  { %p360_p13 = por %p359_p12, %p358_p11 }
 0x11f   :  { %p361_p0 = pnand %p360_p13, %p354_p10 }
 0x121   :  { %364 = shalt.err (!%p361_p0)
}
 0x122   :  { %s365_s24 = scalar_lea.hbm %s464_s3, 128 }
 0x123   :  { %p366_p1 = scmp.ne.s32.totalorder %s464_s3, %s365_s24  ;;  %p369_p2 = scmp.lt.u32.totalorder %s365_s24, %s464_s3 }
 0x125   :  { %p371_p3 = pnand %p369_p2, %p366_p1 }
 0x127   :  { %374 = shalt.err (!%p371_p3)
}
 0x128   :  { %252 = dma.vmem_to_hbm [thread:$0]  %s250_s10, 128, %s464_s3, [#allocation9]  }
 0x129   :  { %379 = dma.done.wait [#allocation4], 128  }
 0x12a   :  { %380 = vsyncadd [#allocation4], 4294967168 }
 0x12b   :  { %381 = dma.done.wait [#allocation9], 128  }
 0x12c   :  { %382 = vsyncadd [#allocation9], 4294967168 }
 0x12d   :  { %259 = vsyncpa [#allocation3], 1 }
 0x12e   :  { %260 = vsyncpa [#allocation6], 1 }
 0x12f   :  { %261 = vsyncpa [#allocation4], 1 }
 0x130   :  { %262 = vsyncpa [#allocation9], 1 }

</bundles_post_ra>
